<compile_context>
chip_gen: v7x
topology: tpu7x:2x2x1
jax: 0.10.0
libtpu: 0.0.40
codegen_flags: <defaults>
</compile_context>

<pallas_src>
import functools

import jax
import jax.numpy as jnp
import numpy as np
from jax.experimental import pallas as pl
from jax.experimental.pallas import tpu as pltpu

EPS = 1e-5


# ----------------------------- Pallas kernels -----------------------------

def _conv_bn(w, p, gamma, beta, *, eps, relu):
    """w: (C_out, K*C_in), p: (K*C_in, M), gamma/beta: (C_out, 1) -> (C_out, M).

    Conv expressed as a single matmul (taps folded into the contraction), followed by
    BatchNorm2d in training mode (biased batch statistics over the M = N*Ho*Wo axis,
    which here is the lane axis) and an optional ReLU. Default MXU precision,
    f32 accumulation. The conv bias is intentionally omitted (cancelled by the BN mean).
    """
    acc = jnp.dot(w, p, preferred_element_type=jnp.float32)      # (C_out, M), f32 acc
    inv_m = 1.0 / p.shape[1]
    mean = jnp.sum(acc, axis=1, keepdims=True) * inv_m           # (C_out, 1) lane reduce
    cen = acc - mean
    var = jnp.sum(cen * cen, axis=1, keepdims=True) * inv_m      # centered -> no cancellation
    y = cen * jax.lax.rsqrt(var + eps) * gamma + beta
    return jnp.maximum(y, 0.0) if relu else y


def conv_bn_act_kernel(w_ref, p_ref, g_ref, b_ref, o_ref, *, apply_relu, eps):
    """Fused conv-as-matmul + BN(batch stats) + optional ReLU. Output (C_out, M)."""
    o_ref[...] = _conv_bn(w_ref[...], p_ref[...], g_ref[...], b_ref[...],
                          eps=eps, relu=apply_relu).astype(o_ref.dtype)


def conv_bn_relu_residual_kernel(w_ref, p_ref, g_ref, b_ref, sc_ref, o_ref, *, eps):
    """conv2 + BN + ReLU fused with the residual add and the block's final ReLU."""
    y = _conv_bn(w_ref[...], p_ref[...], g_ref[...], b_ref[...], eps=eps, relu=True)
    o_ref[...] = jnp.maximum(y + sc_ref[...], 0.0).astype(o_ref.dtype)


# ------------------------------ JAX wrappers -------------------------------

def _vmem():
    return pl.BlockSpec(memory_space=pltpu.MemorySpace.VMEM)


def _im2col_cm(x_nchw, kh, kw, stride, pad):
    """Return ((K*C_in, M) patch matrix, (n, ho, wo)).

    Rows ordered (kh, kw, c_in); columns ordered (n, ho, wo). XLA glue (data movement).
    """
    n, c, h, w = x_nchw.shape
    ho = (h + 2 * pad - kh) // stride + 1
    wo = (w + 2 * pad - kw) // stride + 1
    xp = jnp.pad(x_nchw, ((0, 0), (0, 0), (pad, pad), (pad, pad)))
    taps = []
    for i in range(kh):
        for j in range(kw):
            t = xp[:, :, i:i + stride * ho:stride, j:j + stride * wo:stride]  # (N,C,Ho,Wo)
            taps.append(jnp.transpose(t, (1, 0, 2, 3)).reshape(c, n * ho * wo))
    return jnp.concatenate(taps, axis=0), (n, ho, wo)


def conv_bn_act(x_nchw, w_hwio, gamma, beta, *, stride, apply_relu):
    """Conv(+BN+optional ReLU). Returns output in channels-major (C_out, M) layout."""
    kh, kw, c_in, c_out = w_hwio.shape
    pad = (kh - 1) // 2                     # 1 for 3x3, 0 for 1x1 (matches the module)
    patches, (n, ho, wo) = _im2col_cm(x_nchw, kh, kw, stride, pad)
    w_mat = w_hwio.reshape(kh * kw * c_in, c_out).T       # (C_out, K*C_in)
    m = n * ho * wo
    out_cm = pl.pallas_call(
        functools.partial(conv_bn_act_kernel, apply_relu=apply_relu, eps=EPS),
        out_shape=jax.ShapeDtypeStruct((c_out, m), jnp.float32),
        in_specs=[_vmem()] * 4,
        out_specs=_vmem(),
    )(w_mat, patches, gamma.reshape(c_out, 1), beta.reshape(c_out, 1))
    return out_cm, (n, ho, wo)


def conv_bn_relu_residual(x_nchw, w_hwio, gamma, beta, sc_cm):
    """conv2 + BN + ReLU fused with residual add + final ReLU. sc_cm: (C_out, M)."""
    kh, kw, c_in, c_out = w_hwio.shape
    pad = (kh - 1) // 2
    patches, (n, ho, wo) = _im2col_cm(x_nchw, kh, kw, 1, pad)
    w_mat = w_hwio.reshape(kh * kw * c_in, c_out).T
    m = n * ho * wo
    out_cm = pl.pallas_call(
        functools.partial(conv_bn_relu_residual_kernel, eps=EPS),
        out_shape=jax.ShapeDtypeStruct((c_out, m), jnp.float32),
        in_specs=[_vmem()] * 5,
        out_specs=_vmem(),
    )(w_mat, patches, gamma.reshape(c_out, 1), beta.reshape(c_out, 1), sc_cm)
    return out_cm, (n, ho, wo)


@jax.jit
def residual_block_forward(x_nchw, params):
    """Pallas implementation of ResidualBlock.forward. Input/output: NCHW float32."""
    c_in = x_nchw.shape[1]
    c_out = params["conv1_w"].shape[-1]
    stride1 = 2 if c_in != c_out else 1

    # conv1: 3x3 (stride 1 or 2) + BN + ReLU
    z_cm, (n, ho, wo) = conv_bn_act(x_nchw, params["conv1_w"], params["bn1_g"],
                                    params["bn1_b"], stride=stride1, apply_relu=True)

    # shortcut, produced directly in (C_out, M) layout
    if c_in != c_out:
        sc_cm, _ = conv_bn_act(x_nchw, params["proj_w"], params["bnp_g"], params["bnp_b"],
                               stride=2, apply_relu=False)
    else:
        sc_cm = jnp.transpose(x_nchw, (1, 0, 2, 3)).reshape(c_in, n * ho * wo)

    # conv2 needs z's spatial structure for its own im2col -> back to NCHW (glue only)
    z_nchw = jnp.transpose(z_cm.reshape(c_out, n, ho, wo), (1, 0, 2, 3))

    # conv2 + BN + ReLU + residual add + final ReLU, all in one kernel
    out_cm, _ = conv_bn_relu_residual(z_nchw, params["conv2_w"], params["bn2_g"],
                                      params["bn2_b"], sc_cm)
    return jnp.transpose(out_cm.reshape(c_out, n, ho, wo), (1, 0, 2, 3))


# ------------------------- pure-JAX reference model -------------------------

def _ref_conv_bn(x_nchw, w_hwio, b, gamma, beta, *, stride, relu):
    kh = w_hwio.shape[0]
    pad = (kh - 1) // 2
    w_oihw = jnp.transpose(w_hwio, (3, 2, 0, 1))
    y = jax.lax.conv_general_dilated(
        x_nchw, w_oihw, (stride, stride), ((pad, pad), (pad, pad)),
        dimension_numbers=("NCHW", "OIHW", "NCHW"),
        precision=jax.lax.Precision.HIGHEST)
    y = y + b[None, :, None, None]          # conv bias kept in the reference on purpose:
    mean = y.mean(axis=(0, 2, 3), keepdims=True)   # training-mode BN cancels it exactly.
    var = ((y - mean) ** 2).mean(axis=(0, 2, 3), keepdims=True)
    y = (y - mean) / jnp.sqrt(var + EPS)
    y = y * gamma[None, :, None, None] + beta[None, :, None, None]
    return jnp.maximum(y, 0.0) if relu else y


def _ref_residual_block(x_nchw, params):
    c_in = x_nchw.shape[1]
    c_out = params["conv1_w"].shape[-1]
    stride1 = 2 if c_in != c_out else 1
    z = _ref_conv_bn(x_nchw, params["conv1_w"], params["conv1_b"],
                     params["bn1_g"], params["bn1_b"], stride=stride1, relu=True)
    z = _ref_conv_bn(z, params["conv2_w"], params["conv2_b"],
                     params["bn2_g"], params["bn2_b"], stride=1, relu=True)
    if c_in != c_out:
        sc = _ref_conv_bn(x_nchw, params["proj_w"], params["proj_b"],
                          params["bnp_g"], params["bnp_b"], stride=2, relu=False)
    else:
        sc = x_nchw
    return jnp.maximum(sc + z, 0.0)


# ------------------------------ parameter init ------------------------------

def init_params(key, c_in, c_out):
    ks = jax.random.split(key, 6)

    def conv_init(k, kh, kw, ci, co):
        fan_in = ci * kh * kw
        bound = 1.0 / np.sqrt(fan_in)
        kw_, kb_ = jax.random.split(k)
        w = jax.random.uniform(kw_, (kh, kw, ci, co), jnp.float32, -bound, bound)
        b = jax.random.uniform(kb_, (co,), jnp.float32, -bound, bound)
        return w, b

    p = {}
    p["conv1_w"], p["conv1_b"] = conv_init(ks[0], 3, 3, c_in, c_out)
    p["bn1_g"] = jnp.ones((c_out,), jnp.float32)
    p["bn1_b"] = jnp.zeros((c_out,), jnp.float32)
    p["conv2_w"], p["conv2_b"] = conv_init(ks[1], 3, 3, c_out, c_out)
    p["bn2_g"] = jnp.ones((c_out,), jnp.float32)
    p["bn2_b"] = jnp.zeros((c_out,), jnp.float32)
    if c_in != c_out:
        p["proj_w"], p["proj_b"] = conv_init(ks[2], 1, 1, c_in, c_out)
        p["bnp_g"] = jnp.ones((c_out,), jnp.float32)
        p["bnp_b"] = jnp.zeros((c_out,), jnp.float32)
    return p


# ----------------------------------- main -----------------------------------

if __name__ == "__main__":
    key = jax.random.PRNGKey(0)
    kx, kp1, kp2 = jax.random.split(key, 3)

    # Tolerance note: the Pallas kernels use the MXU's default matmul precision
    # (bf16 multiply passes, f32 accumulate) while the reference uses HIGHEST f32,
    # so per-element differences up to ~1e-2 are expected and acceptable here.
    RTOL, ATOL = 2e-2, 2e-2

    # Case 1: c_in != c_out  -> stride-2 conv1 + 1x1 stride-2 projection shortcut
    x = jax.random.normal(kx, (2, 4, 16, 16), jnp.float32)   # NCHW
    params_a = init_params(kp1, c_in=4, c_out=8)
    out_a = jax.block_until_ready(residual_block_forward(x, params_a))
    ref_a = _ref_residual_block(x, params_a)
    assert out_a.shape == (2, 8, 8, 8)
    np.testing.assert_allclose(np.asarray(out_a), np.asarray(ref_a), rtol=RTOL, atol=ATOL)

    # Case 2: c_in == c_out  -> identity shortcut, all strides 1
    params_b = init_params(kp2, c_in=4, c_out=4)
    out_b = jax.block_until_ready(residual_block_forward(x, params_b))
    ref_b = _ref_residual_block(x, params_b)
    assert out_b.shape == (2, 4, 16, 16)
    np.testing.assert_allclose(np.asarray(out_b), np.asarray(ref_b), rtol=RTOL, atol=ATOL)

    print("KERNEL_OK")
</pallas_src>

<mosaic_0001>
module attributes {stable_mosaic.version = 11 : i64} {
  func.func @conv_bn_act_kernel(%arg0: memref<8x36xf32, #tpu.memory_space<vmem>>, %arg1: memref<36x128xf32, #tpu.memory_space<vmem>>, %arg2: memref<8x1xf32, #tpu.memory_space<vmem>>, %arg3: memref<8x1xf32, #tpu.memory_space<vmem>>, %arg4: memref<8x128xf32, #tpu.memory_space<vmem>>) attributes {dimension_semantics = [], scalar_prefetch = 0 : i64, scratch_operands = 0 : i64, tpu.core_type = #tpu.core_type<tc>} {
    %c0 = arith.constant 0 : index
    %c0_0 = arith.constant 0 : index
    %0 = vector.load %arg0[%c0, %c0_0] : memref<8x36xf32, #tpu.memory_space<vmem>>, vector<8x36xf32>
    %c0_1 = arith.constant 0 : index
    %c0_2 = arith.constant 0 : index
    %1 = vector.load %arg1[%c0_1, %c0_2] : memref<36x128xf32, #tpu.memory_space<vmem>>, vector<36x128xf32>
    %c0_3 = arith.constant 0 : index
    %c0_4 = arith.constant 0 : index
    %2 = vector.load %arg2[%c0_3, %c0_4] : memref<8x1xf32, #tpu.memory_space<vmem>>, vector<8x1xf32>
    %c0_5 = arith.constant 0 : index
    %c0_6 = arith.constant 0 : index
    %3 = vector.load %arg3[%c0_5, %c0_6] : memref<8x1xf32, #tpu.memory_space<vmem>>, vector<8x1xf32>
    %cst = arith.constant dense<0.000000e+00> : vector<8x128xf32>
    %4 = tpu.matmul %0, %1, %cst {dimension_numbers = #tpu.dot_dimension_numbers<[1], [0], [0], [1], [0, 0, 1, 1], [], []>} : vector<8x36xf32>, vector<36x128xf32>, vector<8x128xf32> -> vector<8x128xf32>
    %cst_7 = arith.constant dense<0.000000e+00> : vector<8xf32>
    %5 = vector.multi_reduction <add>, %4, %cst_7 [1] : vector<8x128xf32> to vector<8xf32>
    %6 = vector.shape_cast %5 : vector<8xf32> to vector<8x1xf32>
    %cst_8 = arith.constant 7.812500e-03 : f32
    %7 = vector.broadcast %cst_8 : f32 to vector<8x1xf32>
    %8 = arith.mulf %6, %7 : vector<8x1xf32>
    %9 = vector.broadcast %8 : vector<8x1xf32> to vector<8x128xf32>
    %10 = arith.subf %4, %9 : vector<8x128xf32>
    %11 = arith.mulf %10, %10 : vector<8x128xf32>
    %cst_9 = arith.constant dense<0.000000e+00> : vector<8xf32>
    %12 = vector.multi_reduction <add>, %11, %cst_9 [1] : vector<8x128xf32> to vector<8xf32>
    %13 = vector.shape_cast %12 : vector<8xf32> to vector<8x1xf32>
    %cst_10 = arith.constant 7.812500e-03 : f32
    %14 = vector.broadcast %cst_10 : f32 to vector<8x1xf32>
    %15 = arith.mulf %13, %14 : vector<8x1xf32>
    %cst_11 = arith.constant 9.99999974E-6 : f32
    %16 = vector.broadcast %cst_11 : f32 to vector<8x1xf32>
    %17 = arith.addf %15, %16 : vector<8x1xf32>
    %18 = math.rsqrt %17 : vector<8x1xf32>
    %19 = vector.broadcast %18 : vector<8x1xf32> to vector<8x128xf32>
    %20 = arith.mulf %10, %19 : vector<8x128xf32>
    %21 = vector.broadcast %2 : vector<8x1xf32> to vector<8x128xf32>
    %22 = arith.mulf %20, %21 : vector<8x128xf32>
    %23 = vector.broadcast %3 : vector<8x1xf32> to vector<8x128xf32>
    %24 = arith.addf %22, %23 : vector<8x128xf32>
    %cst_12 = arith.constant 0.000000e+00 : f32
    %25 = vector.broadcast %cst_12 : f32 to vector<8x128xf32>
    %26 = arith.maximumf %24, %25 : vector<8x128xf32>
    %c0_13 = arith.constant 0 : index
    %c0_14 = arith.constant 0 : index
    %27 = vector.load %arg4[%c0_13, %c0_14] : memref<8x128xf32, #tpu.memory_space<vmem>>, vector<8x128xf32>
    tpu.vector_store %arg4[%c0_13, %c0_14], %26 {strides = array<i32>} : memref<8x128xf32, #tpu.memory_space<vmem>>, vector<8x128xf32>,
    return
  }
}

module attributes {stable_mosaic.version = 11 : i64} {
  func.func @conv_bn_act_kernel(%arg0: memref<8x4xf32, #tpu.memory_space<vmem>>, %arg1: memref<4x128xf32, #tpu.memory_space<vmem>>, %arg2: memref<8x1xf32, #tpu.memory_space<vmem>>, %arg3: memref<8x1xf32, #tpu.memory_space<vmem>>, %arg4: memref<8x128xf32, #tpu.memory_space<vmem>>) attributes {dimension_semantics = [], scalar_prefetch = 0 : i64, scratch_operands = 0 : i64, tpu.core_type = #tpu.core_type<tc>} {
    %c0 = arith.constant 0 : index
    %c0_0 = arith.constant 0 : index
    %0 = vector.load %arg0[%c0, %c0_0] : memref<8x4xf32, #tpu.memory_space<vmem>>, vector<8x4xf32>
    %c0_1 = arith.constant 0 : index
    %c0_2 = arith.constant 0 : index
    %1 = vector.load %arg1[%c0_1, %c0_2] : memref<4x128xf32, #tpu.memory_space<vmem>>, vector<4x128xf32>
    %c0_3 = arith.constant 0 : index
    %c0_4 = arith.constant 0 : index
    %2 = vector.load %arg2[%c0_3, %c0_4] : memref<8x1xf32, #tpu.memory_space<vmem>>, vector<8x1xf32>
    %c0_5 = arith.constant 0 : index
    %c0_6 = arith.constant 0 : index
    %3 = vector.load %arg3[%c0_5, %c0_6] : memref<8x1xf32, #tpu.memory_space<vmem>>, vector<8x1xf32>
    %cst = arith.constant dense<0.000000e+00> : vector<8x128xf32>
    %4 = tpu.matmul %0, %1, %cst {dimension_numbers = #tpu.dot_dimension_numbers<[1], [0], [0], [1], [0, 0, 1, 1], [], []>} : vector<8x4xf32>, vector<4x128xf32>, vector<8x128xf32> -> vector<8x128xf32>
    %cst_7 = arith.constant dense<0.000000e+00> : vector<8xf32>
    %5 = vector.multi_reduction <add>, %4, %cst_7 [1] : vector<8x128xf32> to vector<8xf32>
    %6 = vector.shape_cast %5 : vector<8xf32> to vector<8x1xf32>
    %cst_8 = arith.constant 7.812500e-03 : f32
    %7 = vector.broadcast %cst_8 : f32 to vector<8x1xf32>
    %8 = arith.mulf %6, %7 : vector<8x1xf32>
    %9 = vector.broadcast %8 : vector<8x1xf32> to vector<8x128xf32>
    %10 = arith.subf %4, %9 : vector<8x128xf32>
    %11 = arith.mulf %10, %10 : vector<8x128xf32>
    %cst_9 = arith.constant dense<0.000000e+00> : vector<8xf32>
    %12 = vector.multi_reduction <add>, %11, %cst_9 [1] : vector<8x128xf32> to vector<8xf32>
    %13 = vector.shape_cast %12 : vector<8xf32> to vector<8x1xf32>
    %cst_10 = arith.constant 7.812500e-03 : f32
    %14 = vector.broadcast %cst_10 : f32 to vector<8x1xf32>
    %15 = arith.mulf %13, %14 : vector<8x1xf32>
    %cst_11 = arith.constant 9.99999974E-6 : f32
    %16 = vector.broadcast %cst_11 : f32 to vector<8x1xf32>
    %17 = arith.addf %15, %16 : vector<8x1xf32>
    %18 = math.rsqrt %17 : vector<8x1xf32>
    %19 = vector.broadcast %18 : vector<8x1xf32> to vector<8x128xf32>
    %20 = arith.mulf %10, %19 : vector<8x128xf32>
    %21 = vector.broadcast %2 : vector<8x1xf32> to vector<8x128xf32>
    %22 = arith.mulf %20, %21 : vector<8x128xf32>
    %23 = vector.broadcast %3 : vector<8x1xf32> to vector<8x128xf32>
    %24 = arith.addf %22, %23 : vector<8x128xf32>
    %c0_12 = arith.constant 0 : index
    %c0_13 = arith.constant 0 : index
    %25 = vector.load %arg4[%c0_12, %c0_13] : memref<8x128xf32, #tpu.memory_space<vmem>>, vector<8x128xf32>
    tpu.vector_store %arg4[%c0_12, %c0_13], %24 {strides = array<i32>} : memref<8x128xf32, #tpu.memory_space<vmem>>, vector<8x128xf32>,
    return
  }
}

module attributes {stable_mosaic.version = 11 : i64} {
  func.func @conv_bn_relu_residual_kernel(%arg0: memref<8x72xf32, #tpu.memory_space<vmem>>, %arg1: memref<72x128xf32, #tpu.memory_space<vmem>>, %arg2: memref<8x1xf32, #tpu.memory_space<vmem>>, %arg3: memref<8x1xf32, #tpu.memory_space<vmem>>, %arg4: memref<8x128xf32, #tpu.memory_space<vmem>>, %arg5: memref<8x128xf32, #tpu.memory_space<vmem>>) attributes {dimension_semantics = [], scalar_prefetch = 0 : i64, scratch_operands = 0 : i64, tpu.core_type = #tpu.core_type<tc>} {
    %c0 = arith.constant 0 : index
    %c0_0 = arith.constant 0 : index
    %0 = vector.load %arg0[%c0, %c0_0] : memref<8x72xf32, #tpu.memory_space<vmem>>, vector<8x72xf32>
    %c0_1 = arith.constant 0 : index
    %c0_2 = arith.constant 0 : index
    %1 = vector.load %arg1[%c0_1, %c0_2] : memref<72x128xf32, #tpu.memory_space<vmem>>, vector<72x128xf32>
    %c0_3 = arith.constant 0 : index
    %c0_4 = arith.constant 0 : index
    %2 = vector.load %arg2[%c0_3, %c0_4] : memref<8x1xf32, #tpu.memory_space<vmem>>, vector<8x1xf32>
    %c0_5 = arith.constant 0 : index
    %c0_6 = arith.constant 0 : index
    %3 = vector.load %arg3[%c0_5, %c0_6] : memref<8x1xf32, #tpu.memory_space<vmem>>, vector<8x1xf32>
    %cst = arith.constant dense<0.000000e+00> : vector<8x128xf32>
    %4 = tpu.matmul %0, %1, %cst {dimension_numbers = #tpu.dot_dimension_numbers<[1], [0], [0], [1], [0, 0, 1, 1], [], []>} : vector<8x72xf32>, vector<72x128xf32>, vector<8x128xf32> -> vector<8x128xf32>
    %cst_7 = arith.constant dense<0.000000e+00> : vector<8xf32>
    %5 = vector.multi_reduction <add>, %4, %cst_7 [1] : vector<8x128xf32> to vector<8xf32>
    %6 = vector.shape_cast %5 : vector<8xf32> to vector<8x1xf32>
    %cst_8 = arith.constant 7.812500e-03 : f32
    %7 = vector.broadcast %cst_8 : f32 to vector<8x1xf32>
    %8 = arith.mulf %6, %7 : vector<8x1xf32>
    %9 = vector.broadcast %8 : vector<8x1xf32> to vector<8x128xf32>
    %10 = arith.subf %4, %9 : vector<8x128xf32>
    %11 = arith.mulf %10, %10 : vector<8x128xf32>
    %cst_9 = arith.constant dense<0.000000e+00> : vector<8xf32>
    %12 = vector.multi_reduction <add>, %11, %cst_9 [1] : vector<8x128xf32> to vector<8xf32>
    %13 = vector.shape_cast %12 : vector<8xf32> to vector<8x1xf32>
    %cst_10 = arith.constant 7.812500e-03 : f32
    %14 = vector.broadcast %cst_10 : f32 to vector<8x1xf32>
    %15 = arith.mulf %13, %14 : vector<8x1xf32>
    %cst_11 = arith.constant 9.99999974E-6 : f32
    %16 = vector.broadcast %cst_11 : f32 to vector<8x1xf32>
    %17 = arith.addf %15, %16 : vector<8x1xf32>
    %18 = math.rsqrt %17 : vector<8x1xf32>
    %19 = vector.broadcast %18 : vector<8x1xf32> to vector<8x128xf32>
    %20 = arith.mulf %10, %19 : vector<8x128xf32>
    %21 = vector.broadcast %2 : vector<8x1xf32> to vector<8x128xf32>
    %22 = arith.mulf %20, %21 : vector<8x128xf32>
    %23 = vector.broadcast %3 : vector<8x1xf32> to vector<8x128xf32>
    %24 = arith.addf %22, %23 : vector<8x128xf32>
    %cst_12 = arith.constant 0.000000e+00 : f32
    %25 = vector.broadcast %cst_12 : f32 to vector<8x128xf32>
    %26 = arith.maximumf %24, %25 : vector<8x128xf32>
    %c0_13 = arith.constant 0 : index
    %c0_14 = arith.constant 0 : index
    %27 = vector.load %arg4[%c0_13, %c0_14] : memref<8x128xf32, #tpu.memory_space<vmem>>, vector<8x128xf32>
    %28 = arith.addf %26, %27 : vector<8x128xf32>
    %cst_15 = arith.constant 0.000000e+00 : f32
    %29 = vector.broadcast %cst_15 : f32 to vector<8x128xf32>
    %30 = arith.maximumf %28, %29 : vector<8x128xf32>
    %c0_16 = arith.constant 0 : index
    %c0_17 = arith.constant 0 : index
    %31 = vector.load %arg5[%c0_16, %c0_17] : memref<8x128xf32, #tpu.memory_space<vmem>>, vector<8x128xf32>
    tpu.vector_store %arg5[%c0_16, %c0_17], %30 {strides = array<i32>} : memref<8x128xf32, #tpu.memory_space<vmem>>, vector<8x128xf32>,
    return
  }
}

</mosaic_0001>

<bundles_post_ra>
// kernel: residual_block_forward.3
= control target key start
LH: loop header
LB: loop body
LE: loop exit
PB: predicated region body
PF: predicated region fallthrough
CT: control target
= control target key end

     0   :  { %v167_v0 = vmov 0.0|0.0   ;;  %vm168_vm0 = vmmov 0   ;;  %v169_v4 = vmov 0.0   ;;  %vm29_vm1 = vcmask 1043456   ;;  %s223_s1 = inlined_call_operand.vmem [shape: f32[36,128], index: 1, kind: input, shape index: {}]   ;;  %s224_s0 = inlined_call_operand.vmem [shape: f32[8,36], index: 0, kind: input, shape index: {}]   ;;  %s225_s2 = inlined_call_operand.vmem [shape: f32[8,1], index: 2, kind: input, shape index: {}]   ;;  %s226_s3 = inlined_call_operand.vmem [shape: f32[8,1], index: 3, kind: input, shape index: {}]   ;;  %s227_s4 = inlined_call_operand.vmem [shape: f32[8,128], index: 4, kind: output, shape index: {}]  }
   0x1   :  { %153 = vmatprep.subr.bf16.mxu0 %v167_v0  ;;  %v18_v1 = vld [vmem:[%s223_s1] sm:$0xff]  ;;  %v19_v2 = vld [vmem:[%s223_s1 + $0x8] sm:$0xff]  ;;  %v20_v3 = vld [vmem:[%s223_s1 + $0x10] sm:$0xff]  ;;  %150 = vmatprep.mubr.msk.f32.mxu0 %vm168_vm0, %v169_v4  ;;  %vm25_vm2 = vcmask 293888   ;;  %v170_v12 = vmov 0  }
   0x2   :  { %v154_v5 = vpack.c.bf16 %v19_v2, %v18_v1  ;;  %v21_v6 = vld [vmem:[%s223_s1 + $0x18] sm:$0xff]  ;;  %v22_v8 = vld [vmem:[%s223_s1 + $0x20] sm:$0xf]  ;;  %163 = vset.pattern.permute.xlu1 %v170_v12  ;;  %164 = vset.pattern.permute.xlu0 %v170_v12 }
   0x3   :  { %v157_v7 = vpack.c.bf16 %v21_v6, %v20_v3  ;;  %v17_v9 = vld [vmem:[%s224_s0] sm:$0xff] }
   0x4   :  { %155 = vmatpush3.bf16.msra.mxu0 %v154_v5  ;;  %v23_v13 = vld [vmem:[%s225_s2] sm:$0xff] }
   0x5   :  { %156 = vmatprep.subr.bf16.mxu0 %v167_v0  ;;  %116 = vperm.xlu1 %163, %v23_v13   ;;  %v24_v14 = vld [vmem:[%s226_s3] sm:$0xff] }
   0x8   :  { %158 = vmatpush3.bf16.msra.mxu0 %v157_v7 }
   0x9   :  { %148 = vmatprep.subr.mxu0 %v169_v4  ;;  %122 = vperm.xlu1 %163, %v24_v14  }
   0xc   :  { %149 = vmatpush3.msk.msra.mxu0 %vm29_vm1, %v22_v8 }
   0xd   :  { %151 = vmatmul.mubr.msk.f32.vlgmr.msra.gmra.mrb[0].mxu0 %vm25_vm2, %v17_v9 }
  0x84   :  { %v117_v22 = vpop.permute.xlu1 %116 }
  0x88   :  { %v123_v26 = vpop.permute.xlu1 %122 }
  0xe0   :  { %v99_v10 = vpop.f32.mrb[0].mxu0 }
  0xe1   :  { %103 = vadd.xlane.f32.xlu0 %v99_v10  ;;  %v152_v11 = vpop.f32.mrb[1].mxu0 }
 0x16e   :  { %v104_v15 = vpop.xlane.xlu0 %103 }
 0x16f   :  { %v105_v16 = vmul.f32 0.0078125, %v104_v15 }
 0x171   :  { %v106_v17 = vsub.f32 %v99_v10, %v105_v16 }
 0x173   :  { %v107_v18 = vmul.f32 %v106_v17, %v106_v17 }
 0x175   :  { %108 = vadd.xlane.f32.xlu0 %v107_v18 }
 0x202   :  { %v109_v19 = vpop.xlane.xlu0 %108 }
 0x203   :  { %v110_v20 = vmul.f32 0.0078125, %v109_v19 }
 0x205   :  { %v111_v21 = vadd.f32 1e-05, %v110_v20 }
 0x207   :  { %165 = vrsqrt.f32 %v111_v21 }
 0x211   :  { %v166_v23 = vpop.eup %165 }
 0x212   :  { %v113_v24 = vmul.f32 %v166_v23, %v106_v17 }
 0x214   :  { %v119_v25 = vmul.f32 %v117_v22, %v113_v24 }
 0x216   :  { %v125_v27 = vadd.f32 %v123_v26, %v119_v25 }
 0x218   :  { %v126_v28 = vmax.f32 %v125_v27, 0.0 }
 0x21a   :  { %127 = vst [vmem:[%s227_s4] sm:$0xff] %v126_v28 }

// kernel: residual_block_forward.4
= control target key start
LH: loop header
LB: loop body
LE: loop exit
PB: predicated region body
PF: predicated region fallthrough
CT: control target
= control target key end

     0   :  { %vm25_vm0 = vcmask 1043456   ;;  %vm21_vm1 = vcmask 31744   ;;  %v143_v0 = vmov 0.0   ;;  %vm144_vm2 = vmmov 0   ;;  %s186_s1 = inlined_call_operand.vmem [shape: f32[4,128], index: 1, kind: input, shape index: {}]   ;;  %s187_s0 = inlined_call_operand.vmem [shape: f32[8,4], index: 0, kind: input, shape index: {}]   ;;  %s188_s2 = inlined_call_operand.vmem [shape: f32[8,1], index: 2, kind: input, shape index: {}]   ;;  %s189_s3 = inlined_call_operand.vmem [shape: f32[8,1], index: 3, kind: input, shape index: {}]   ;;  %s190_s4 = inlined_call_operand.vmem [shape: f32[8,128], index: 4, kind: output, shape index: {}]  }
   0x1   :  { %131 = vmatprep.subr.mxu0 %v143_v0  ;;  %v18_v1 = vld [vmem:[%s186_s1] sm:$0xf]  ;;  %133 = vmatprep.mubr.msk.f32.mxu0 %vm144_vm2, %v143_v0  ;;  %v145_v5 = vmov 0  }
   0x2   :  { %v17_v2 = vld [vmem:[%s187_s0] sm:$0xff]  ;;  %132 = vmatpush3.msk.msra.mxu0 %vm25_vm0, %v18_v1  ;;  %139 = vset.pattern.permute.xlu1 %v145_v5 }
   0x3   :  { %134 = vmatmul.mubr.msk.f32.vlgmr.msra.gmra.mrb[0].mxu0 %vm21_vm1, %v17_v2  ;;  %v19_v6 = vld [vmem:[%s188_s2] sm:$0xff]  ;;  %140 = vset.pattern.permute.xlu0 %v145_v5 }
   0x4   :  { %112 = vperm.xlu1 %139, %v19_v6   ;;  %v20_v7 = vld [vmem:[%s189_s3] sm:$0xff] }
   0x8   :  { %118 = vperm.xlu1 %139, %v20_v7  }
  0x83   :  { %v113_v15 = vpop.permute.xlu1 %112 }
  0x87   :  { %v119_v19 = vpop.permute.xlu1 %118 }
  0xd6   :  { %v95_v3 = vpop.f32.mrb[0].mxu0 }
  0xd7   :  { %99 = vadd.xlane.f32.xlu0 %v95_v3  ;;  %v135_v4 = vpop.f32.mrb[1].mxu0 }
 0x164   :  { %v100_v8 = vpop.xlane.xlu0 %99 }
 0x165   :  { %v101_v9 = vmul.f32 0.0078125, %v100_v8 }
 0x167   :  { %v102_v10 = vsub.f32 %v95_v3, %v101_v9 }
 0x169   :  { %v103_v11 = vmul.f32 %v102_v10, %v102_v10 }
 0x16b   :  { %104 = vadd.xlane.f32.xlu0 %v103_v11 }
 0x1f8   :  { %v105_v12 = vpop.xlane.xlu0 %104 }
 0x1f9   :  { %v106_v13 = vmul.f32 0.0078125, %v105_v12 }
 0x1fb   :  { %v107_v14 = vadd.f32 1e-05, %v106_v13 }
 0x1fd   :  { %141 = vrsqrt.f32 %v107_v14 }
 0x207   :  { %v142_v16 = vpop.eup %141 }
 0x208   :  { %v109_v17 = vmul.f32 %v142_v16, %v102_v10 }
 0x20a   :  { %v115_v18 = vmul.f32 %v113_v15, %v109_v17 }
 0x20c   :  { %v121_v20 = vadd.f32 %v119_v19, %v115_v18 }
 0x20e   :  { %122 = vst [vmem:[%s190_s4] sm:$0xff] %v121_v20 }

// kernel: residual_block_forward.5
= control target key start
LH: loop header
LB: loop body
LE: loop exit
PB: predicated region body
PF: predicated region fallthrough
CT: control target
= control target key end

     0   :  { %v190_v0 = vmov 0.0|0.0   ;;  %vm191_vm0 = vmmov 0   ;;  %v192_v4 = vmov 0.0   ;;  %vm32_vm1 = vcmask 588800   ;;  %s266_s1 = inlined_call_operand.vmem [shape: f32[72,128], index: 1, kind: input, shape index: {}]   ;;  %s267_s0 = inlined_call_operand.vmem [shape: f32[8,72], index: 0, kind: input, shape index: {}]   ;;  %s268_s2 = inlined_call_operand.vmem [shape: f32[8,1], index: 2, kind: input, shape index: {}]   ;;  %s269_s3 = inlined_call_operand.vmem [shape: f32[8,1], index: 3, kind: input, shape index: {}]   ;;  %s270_s4 = inlined_call_operand.vmem [shape: f32[8,128], index: 4, kind: input, shape index: {}]   ;;  %s271_s5 = inlined_call_operand.vmem [shape: f32[8,128], index: 5, kind: output, shape index: {}]  }
   0x1   :  { %170 = vmatprep.subr.bf16.mxu0 %v190_v0  ;;  %v21_v1 = vld [vmem:[%s266_s1] sm:$0xff]  ;;  %v22_v2 = vld [vmem:[%s266_s1 + $0x8] sm:$0xff]  ;;  %v23_v3 = vld [vmem:[%s266_s1 + $0x10] sm:$0xff]  ;;  %167 = vmatprep.mubr.msk.f32.mxu0 %vm191_vm0, %v192_v4  ;;  %v193_v18 = vmov 0  }
   0x2   :  { %v171_v5 = vpack.c.bf16 %v22_v2, %v21_v1  ;;  %v24_v6 = vld [vmem:[%s266_s1 + $0x18] sm:$0xff]  ;;  %v25_v8 = vld [vmem:[%s266_s1 + $0x20] sm:$0xff]  ;;  %v26_v9 = vld [vmem:[%s266_s1 + $0x28] sm:$0xff]  ;;  %186 = vset.pattern.permute.xlu1 %v193_v18  ;;  %187 = vset.pattern.permute.xlu0 %v193_v18 }
   0x3   :  { %v174_v7 = vpack.c.bf16 %v24_v6, %v23_v3  ;;  %v177_v10 = vpack.c.bf16 %v26_v9, %v25_v8  ;;  %v27_v11 = vld [vmem:[%s266_s1 + $0x30] sm:$0xff]  ;;  %v28_v12 = vld [vmem:[%s266_s1 + $0x38] sm:$0xff]  ;;  %v29_v14 = vld [vmem:[%s266_s1 + $0x40] sm:$0xff] }
   0x4   :  { %172 = vmatpush3.bf16.msra.mxu0 %v171_v5  ;;  %v180_v13 = vpack.c.bf16 %v28_v12, %v27_v11  ;;  %v20_v15 = vld [vmem:[%s267_s0] sm:$0xff] }
   0x5   :  { %173 = vmatprep.subr.bf16.mxu0 %v190_v0  ;;  %v30_v19 = vld [vmem:[%s268_s2] sm:$0xff] }
   0x6   :  { %119 = vperm.xlu1 %186, %v30_v19   ;;  %v31_v20 = vld [vmem:[%s269_s3] sm:$0xff] }
   0x7   :  { %v130_v34 = vld [vmem:[%s270_s4] sm:$0xff] }
   0x8   :  { %175 = vmatpush3.bf16.msra.mxu0 %v174_v7 }
   0x9   :  { %176 = vmatprep.subr.bf16.mxu0 %v190_v0 }
   0xa   :  { %125 = vperm.xlu1 %186, %v31_v20  }
   0xc   :  { %178 = vmatpush3.bf16.msra.mxu0 %v177_v10 }
   0xd   :  { %179 = vmatprep.subr.bf16.mxu0 %v190_v0 }
  0x10   :  { %181 = vmatpush3.bf16.msra.mxu0 %v180_v13 }
  0x11   :  { %165 = vmatprep.subr.mxu0 %v192_v4 }
  0x14   :  { %166 = vmatpush3.msra.mxu0 %v29_v14 }
  0x15   :  { %168 = vmatmul.mubr.msk.f32.vlgmr.msra.gmra.mrb[0].mxu0 %vm32_vm1, %v20_v15 }
  0x85   :  { %v120_v28 = vpop.permute.xlu1 %119 }
  0x89   :  { %v126_v32 = vpop.permute.xlu1 %125 }
  0xe8   :  { %v102_v16 = vpop.f32.mrb[0].mxu0 }
  0xe9   :  { %106 = vadd.xlane.f32.xlu0 %v102_v16  ;;  %v169_v17 = vpop.f32.mrb[1].mxu0 }
 0x176   :  { %v107_v21 = vpop.xlane.xlu0 %106 }
 0x177   :  { %v108_v22 = vmul.f32 0.0078125, %v107_v21 }
 0x179   :  { %v109_v23 = vsub.f32 %v102_v16, %v108_v22 }
 0x17b   :  { %v110_v24 = vmul.f32 %v109_v23, %v109_v23 }
 0x17d   :  { %111 = vadd.xlane.f32.xlu0 %v110_v24 }
 0x20a   :  { %v112_v25 = vpop.xlane.xlu0 %111 }
 0x20b   :  { %v113_v26 = vmul.f32 0.0078125, %v112_v25 }
 0x20d   :  { %v114_v27 = vadd.f32 1e-05, %v113_v26 }
 0x20f   :  { %188 = vrsqrt.f32 %v114_v27 }
 0x219   :  { %v189_v29 = vpop.eup %188 }
 0x21a   :  { %v116_v30 = vmul.f32 %v189_v29, %v109_v23 }
 0x21c   :  { %v122_v31 = vmul.f32 %v120_v28, %v116_v30 }
 0x21e   :  { %v128_v33 = vadd.f32 %v126_v32, %v122_v31 }
 0x220   :  { %v129_v35 = vmax.f32 %v128_v33, 0.0 }
 0x222   :  { %v131_v36 = vadd.f32 %v130_v34, %v129_v35 }
 0x224   :  { %v132_v37 = vmax.f32 %v131_v36, 0.0 }
 0x226   :  { %133 = vst [vmem:[%s271_s5] sm:$0xff] %v132_v37 }

</bundles_post_ra>
